<compile_context>
chip_gen: v7x
topology: tpu7x:2x2x1
jax: 0.10.0
libtpu: 0.0.40
codegen_flags: <defaults>
</compile_context>

<pallas_src>
import functools

import jax
import jax.numpy as jnp
from jax import lax
from jax.experimental import pallas as pl
from jax.experimental.pallas import tpu as pltpu


def _lstm_cell_kernel(comb_ref, gwide_ref, wcols_ref, b_ref, cpre_ref,
                      h_ref, c_ref, proj_ref, *, K, N, P, H, TB):
    """One batch block (TB batch elements) per grid step.

    comb_ref  : [TB*N, P]     bf16   combined [x | h] rows for this block
    gwide_ref : [N, K*N]      bf16   G_wide[i, k*N + j] = G[k, i, j]  (shared)
    wcols_ref : [P, K*4H]     bf16   W_cols[p, k*4H + q] = W[k*P + p, q] (shared)
    b_ref     : [1, 4H]       f32    bias (shared)
    cpre_ref  : [TB, N, H]    f32    previous cell state
    h_ref     : [TB, N, H]    f32    output hidden state
    c_ref     : [TB, N, H]    f32    output cell state
    proj_ref  : [TB*N, K*4H]  f32    VMEM scratch (lane-dense, single rounding)
    """
    FH = 4 * H

    # ---- Stage 1: gate projection for the whole batch block (1 MXU pass). ----
    # proj[b*N + j, k*4H + q] = sum_p comb[b, j, p] * W[k*P + p, q]
    proj_ref[...] = jnp.dot(comb_ref[...], wcols_ref[...],
                            preferred_element_type=jnp.float32)

    gwide = gwide_ref[...]          # [N, K*N] bf16  (hoisted out of the loop)
    bias = b_ref[...]               # [1, 4H]  f32

    # ---- Stage 2: graph mixing + gates + state update, one batch elem/iter. ----
    def body(b, carry):
        row0 = pl.multiple_of(b * N, N)
        # Gather the K gate-projection column groups of this batch element into
        # a single [K*N, 4H] RHS (128-aligned column slices + a sublane concat),
        # so the graph mixing is ONE matmul with contraction depth K*N.
        rhs = jnp.concatenate(
            [proj_ref[pl.ds(row0, N), k * FH:(k + 1) * FH] for k in range(K)],
            axis=0).astype(jnp.bfloat16)                       # [K*N, 4H]
        gates = jnp.dot(gwide, rhs,
                        preferred_element_type=jnp.float32) + bias   # [N, 4H]

        i = jax.nn.sigmoid(gates[:, 0 * H:1 * H])
        f = jax.nn.sigmoid(gates[:, 1 * H:2 * H])
        o = jax.nn.sigmoid(gates[:, 2 * H:3 * H])
        g = jnp.tanh(gates[:, 3 * H:4 * H])

        c_prev = cpre_ref[b]                                   # [N, H] f32
        c_t = f * c_prev + i * g
        h_t = o * jnp.tanh(c_t)

        h_ref[b] = h_t
        c_ref[b] = c_t
        return carry

    lax.fori_loop(0, TB, body, 0, unroll=True)


def _pick_batch_tile(B, N, target_rows=512):
    """Largest divisor of B with TB*N <~ target_rows, keeping >= 2 grid steps."""
    tb = max(1, min(B, max(1, target_rows // max(N, 1))))
    if B >= 2:
        tb = min(tb, B // 2)   # keep the grid >= 2 so dual-TC chips split work
    tb = max(tb, 1)
    while B % tb != 0:
        tb -= 1
    return tb


def lstm_cell_forward(G, x_t, h_pre, c_pre, W, b):
    """Pallas implementation of LSTM_Cell.forward."""
    K, N, _ = G.shape
    B, _, C = x_t.shape
    H = h_pre.shape[-1]
    P = C + H
    FH = 4 * H
    assert W.shape == (K * P, FH)   # rows blocked k-major: W[k*P + p, q]
    assert b.shape == (FH,)

    TB = _pick_batch_tile(B, N)

    # --- Host-side layout prep (cheap one-off XLA ops, all lane-dense) -------
    # combined = cat([x, h], -1), flattened so the kernel block is 2-D [TB*N, P].
    comb2d = jnp.concatenate([x_t, h_pre], axis=-1).reshape(B * N, P)
    comb2d = comb2d.astype(jnp.bfloat16)
    # G_wide[i, k*N + j] = G[k, i, j]
    g_wide = jnp.transpose(G, (1, 0, 2)).reshape(N, K * N).astype(jnp.bfloat16)
    # W_cols[p, k*4H + q] = W[k*P + p, q]  (matches concat_k(G_k @ comb) @ W)
    w_cols = jnp.transpose(W.reshape(K, P, FH), (1, 0, 2)).reshape(P, K * FH)
    w_cols = w_cols.astype(jnp.bfloat16)
    b2d = b.reshape(1, FH).astype(jnp.float32)
    c_pre_f32 = c_pre.astype(jnp.float32)

    kernel = functools.partial(_lstm_cell_kernel, K=K, N=N, P=P, H=H, TB=TB)

    grid_spec = pltpu.PrefetchScalarGridSpec(
        num_scalar_prefetch=0,
        grid=(B // TB,),
        in_specs=[
            pl.BlockSpec((TB * N, P), lambda i: (i, 0)),       # combined tile
            pl.BlockSpec((N, K * N), lambda i: (0, 0)),        # G_wide (shared)
            pl.BlockSpec((P, K * FH), lambda i: (0, 0)),       # W_cols (shared)
            pl.BlockSpec((1, FH), lambda i: (0, 0)),           # bias   (shared)
            pl.BlockSpec((TB, N, H), lambda i: (i, 0, 0)),     # c_pre tile
        ],
        out_specs=[
            pl.BlockSpec((TB, N, H), lambda i: (i, 0, 0)),     # h_t
            pl.BlockSpec((TB, N, H), lambda i: (i, 0, 0)),     # c_t
        ],
        scratch_shapes=[
            pltpu.VMEM((TB * N, K * FH), jnp.float32),         # stage-1 result
        ],
    )

    h_t, c_t = pl.pallas_call(
        kernel,
        out_shape=(jax.ShapeDtypeStruct((B, N, H), jnp.float32),
                   jax.ShapeDtypeStruct((B, N, H), jnp.float32)),
        grid_spec=grid_spec,
        compiler_params=pltpu.CompilerParams(
            dimension_semantics=("parallel",),
            vmem_limit_bytes=64 * 1024 * 1024,
        ),
    )(comb2d, g_wide, w_cols, b2d, c_pre_f32)
    return h_t, c_t


def _reference_forward(G, x_t, h_pre, c_pre, W, b):
    """Pure-JAX f32 reference mirroring the PyTorch module."""
    K = G.shape[0]
    H = h_pre.shape[-1]
    combined = jnp.concatenate([x_t, h_pre], axis=-1)
    supports = [jnp.einsum('ij,bjp->bip', G[k], combined) for k in range(K)]
    support_cat = jnp.concatenate(supports, axis=-1)
    gates = jnp.einsum('bip,pq->biq', support_cat, W) + b
    gi, gf, go, gg = jnp.split(gates, 4, axis=-1)
    i = jax.nn.sigmoid(gi)
    f = jax.nn.sigmoid(gf)
    o = jax.nn.sigmoid(go)
    g = jnp.tanh(gg)
    c_t = f * c_pre + i * g
    h_t = o * jnp.tanh(c_t)
    return h_t, c_t


if __name__ == "__main__":
    # Small shapes consistent with the module's forward signature.
    B, N, C, H, K = 2, 16, 4, 32, 3
    P = C + H

    key = jax.random.PRNGKey(0)
    kG, kx, kh, kc, kW = jax.random.split(key, 5)

    G = jax.random.normal(kG, (K, N, N), jnp.float32)
    x_t = jax.random.normal(kx, (B, N, C), jnp.float32)
    h_pre = jax.random.normal(kh, (B, N, H), jnp.float32)
    c_pre = jax.random.normal(kc, (B, N, H), jnp.float32)

    # Deterministic parameter init matching nn.init.xavier_normal_ / constant_.
    fan_in, fan_out = K * P, 4 * H
    std = (2.0 / (fan_in + fan_out)) ** 0.5
    W = std * jax.random.normal(kW, (K * P, 4 * H), jnp.float32)
    b = jnp.zeros((4 * H,), jnp.float32)

    h_t, c_t = lstm_cell_forward(G, x_t, h_pre, c_pre, W, b)
    jax.block_until_ready((h_t, c_t))

    h_ref, c_ref = _reference_forward(G, x_t, h_pre, c_pre, W, b)
    # bf16 MXU operands vs. f32 reference -> loosened tolerances.
    assert jnp.allclose(h_t, h_ref, atol=5e-2, rtol=5e-2)
    assert jnp.allclose(c_t, c_ref, atol=5e-2, rtol=5e-2)

    print("KERNEL_OK")
</pallas_src>

<mosaic_0001>
module attributes {stable_mosaic.version = 11 : i64} {
  func.func @_lstm_cell_kernel(%arg0: i32, %arg1: memref<16x36xbf16, #tpu.memory_space<vmem>>, %arg2: memref<16x48xbf16, #tpu.memory_space<vmem>>, %arg3: memref<36x384xbf16, #tpu.memory_space<vmem>>, %arg4: memref<1x128xf32, #tpu.memory_space<vmem>>, %arg5: memref<1x16x32xf32, #tpu.memory_space<vmem>>, %arg6: memref<1x16x32xf32, #tpu.memory_space<vmem>>, %arg7: memref<1x16x32xf32, #tpu.memory_space<vmem>>, %arg8: memref<16x384xf32, #tpu.memory_space<vmem>>) attributes {dimension_semantics = [#tpu.dimension_semantics<parallel>], iteration_bounds = array<i64: 2>, scalar_prefetch = 0 : i64, scratch_operands = 1 : i64, tpu.core_type = #tpu.core_type<tc>, window_params = [{transform_indices = @transform_0, window_bounds = array<i64: 16, 36>}, {pipeline_mode = #tpu.pipeline_mode<synchronous>, transform_indices = @transform_1, window_bounds = array<i64: 16, 48>}, {pipeline_mode = #tpu.pipeline_mode<synchronous>, transform_indices = @transform_2, window_bounds = array<i64: 36, 384>}, {pipeline_mode = #tpu.pipeline_mode<synchronous>, transform_indices = @transform_3, window_bounds = array<i64: 1, 128>}, {transform_indices = @transform_4, window_bounds = array<i64: 1, 16, 32>}, {transform_indices = @transform_5, window_bounds = array<i64: 1, 16, 32>}, {transform_indices = @transform_6, window_bounds = array<i64: 1, 16, 32>}]} {
    %c0 = arith.constant 0 : index
    %c0_0 = arith.constant 0 : index
    %0 = vector.load %arg1[%c0, %c0_0] : memref<16x36xbf16, #tpu.memory_space<vmem>>, vector<16x36xbf16>
    %c0_1 = arith.constant 0 : index
    %c0_2 = arith.constant 0 : index
    %1 = vector.load %arg3[%c0_1, %c0_2] : memref<36x384xbf16, #tpu.memory_space<vmem>>, vector<36x384xbf16>
    %cst = arith.constant dense<0.000000e+00> : vector<16x384xf32>
    %2 = tpu.matmul %0, %1, %cst {dimension_numbers = #tpu.dot_dimension_numbers<[1], [0], [0], [1], [0, 0, 1, 1], [], []>} : vector<16x36xbf16>, vector<36x384xbf16>, vector<16x384xf32> -> vector<16x384xf32>
    %c0_3 = arith.constant 0 : index
    %c0_4 = arith.constant 0 : index
    %3 = vector.load %arg8[%c0_3, %c0_4] : memref<16x384xf32, #tpu.memory_space<vmem>>, vector<16x384xf32>
    tpu.vector_store %arg8[%c0_3, %c0_4], %2 {strides = array<i32>} : memref<16x384xf32, #tpu.memory_space<vmem>>, vector<16x384xf32>,
    %c0_5 = arith.constant 0 : index
    %c0_6 = arith.constant 0 : index
    %4 = vector.load %arg2[%c0_5, %c0_6] : memref<16x48xbf16, #tpu.memory_space<vmem>>, vector<16x48xbf16>
    %c0_7 = arith.constant 0 : index
    %c0_8 = arith.constant 0 : index
    %5 = vector.load %arg4[%c0_7, %c0_8] : memref<1x128xf32, #tpu.memory_space<vmem>>, vector<1x128xf32>
    %c0_i32 = arith.constant 0 : i32
    %c16_i32 = arith.constant 16 : i32
    %6 = arith.muli %c0_i32, %c16_i32 : i32
    %7 = tpu.assume_multiple %6, 16 : i32
    %8 = arith.index_cast %7 : i32 to index
    %c0_9 = arith.constant 0 : index
    %9 = vector.load %arg8[%8, %c0_9] : memref<16x384xf32, #tpu.memory_space<vmem>>, vector<16x128xf32>
    %10 = arith.index_cast %7 : i32 to index
    %c128 = arith.constant 128 : index
    %11 = vector.load %arg8[%10, %c128] : memref<16x384xf32, #tpu.memory_space<vmem>>, vector<16x128xf32>
    %12 = arith.index_cast %7 : i32 to index
    %c256 = arith.constant 256 : index
    %13 = vector.load %arg8[%12, %c256] : memref<16x384xf32, #tpu.memory_space<vmem>>, vector<16x128xf32>
    %14 = tpu.concatenate %9, %11, %13 in 0 : vector<16x128xf32>, vector<16x128xf32>, vector<16x128xf32> -> vector<48x128xf32>
    %15 = arith.truncf %14 : vector<48x128xf32> to vector<48x128xbf16>
    %cst_10 = arith.constant dense<0.000000e+00> : vector<16x128xf32>
    %16 = tpu.matmul %4, %15, %cst_10 {dimension_numbers = #tpu.dot_dimension_numbers<[1], [0], [0], [1], [0, 0, 1, 1], [], []>} : vector<16x48xbf16>, vector<48x128xbf16>, vector<16x128xf32> -> vector<16x128xf32>
    %17 = vector.broadcast %5 : vector<1x128xf32> to vector<16x128xf32>
    %18 = arith.addf %16, %17 : vector<16x128xf32>
    %19 = vector.extract_strided_slice %18 {offsets = [0, 0], sizes = [16, 32], strides = [1, 1]} : vector<16x128xf32> to vector<16x32xf32>
    %20 = arith.negf %19 : vector<16x32xf32>
    %21 = math.exp %20 : vector<16x32xf32>
    %cst_11 = arith.constant 1.000000e+00 : f32
    %22 = vector.broadcast %cst_11 : f32 to vector<16x32xf32>
    %23 = arith.addf %22, %21 : vector<16x32xf32>
    %24 = arith.divf %22, %23 : vector<16x32xf32>
    %25 = vector.extract_strided_slice %18 {offsets = [0, 32], sizes = [16, 32], strides = [1, 1]} : vector<16x128xf32> to vector<16x32xf32>
    %26 = arith.negf %25 : vector<16x32xf32>
    %27 = math.exp %26 : vector<16x32xf32>
    %cst_12 = arith.constant 1.000000e+00 : f32
    %28 = vector.broadcast %cst_12 : f32 to vector<16x32xf32>
    %29 = arith.addf %28, %27 : vector<16x32xf32>
    %30 = arith.divf %28, %29 : vector<16x32xf32>
    %31 = vector.extract_strided_slice %18 {offsets = [0, 64], sizes = [16, 32], strides = [1, 1]} : vector<16x128xf32> to vector<16x32xf32>
    %32 = arith.negf %31 : vector<16x32xf32>
    %33 = math.exp %32 : vector<16x32xf32>
    %cst_13 = arith.constant 1.000000e+00 : f32
    %34 = vector.broadcast %cst_13 : f32 to vector<16x32xf32>
    %35 = arith.addf %34, %33 : vector<16x32xf32>
    %36 = arith.divf %34, %35 : vector<16x32xf32>
    %37 = vector.extract_strided_slice %18 {offsets = [0, 96], sizes = [16, 32], strides = [1, 1]} : vector<16x128xf32> to vector<16x32xf32>
    %38 = math.tanh %37 : vector<16x32xf32>
    %39 = arith.index_cast %c0_i32 : i32 to index
    %c0_14 = arith.constant 0 : index
    %c0_15 = arith.constant 0 : index
    %40 = vector.load %arg5[%39, %c0_14, %c0_15] : memref<1x16x32xf32, #tpu.memory_space<vmem>>, vector<1x16x32xf32>
    %41 = vector.shape_cast %40 : vector<1x16x32xf32> to vector<16x32xf32>
    %42 = arith.mulf %30, %41 : vector<16x32xf32>
    %43 = arith.mulf %24, %38 : vector<16x32xf32>
    %44 = arith.addf %42, %43 : vector<16x32xf32>
    %45 = math.tanh %44 : vector<16x32xf32>
    %46 = arith.mulf %36, %45 : vector<16x32xf32>
    %47 = arith.index_cast %c0_i32 : i32 to index
    %c0_16 = arith.constant 0 : index
    %c0_17 = arith.constant 0 : index
    %48 = vector.load %arg6[%47, %c0_16, %c0_17] : memref<1x16x32xf32, #tpu.memory_space<vmem>>, vector<1x16x32xf32>
    %49 = vector.shape_cast %48 : vector<1x16x32xf32> to vector<16x32xf32>
    %50 = vector.shape_cast %46 : vector<16x32xf32> to vector<1x16x32xf32>
    tpu.vector_store %arg6[%47, %c0_16, %c0_17], %50 {strides = array<i32>} : memref<1x16x32xf32, #tpu.memory_space<vmem>>, vector<1x16x32xf32>,
    %51 = arith.index_cast %c0_i32 : i32 to index
    %c0_18 = arith.constant 0 : index
    %c0_19 = arith.constant 0 : index
    %52 = vector.load %arg7[%51, %c0_18, %c0_19] : memref<1x16x32xf32, #tpu.memory_space<vmem>>, vector<1x16x32xf32>
    %53 = vector.shape_cast %52 : vector<1x16x32xf32> to vector<16x32xf32>
    %54 = vector.shape_cast %44 : vector<16x32xf32> to vector<1x16x32xf32>
    tpu.vector_store %arg7[%51, %c0_18, %c0_19], %54 {strides = array<i32>} : memref<1x16x32xf32, #tpu.memory_space<vmem>>, vector<1x16x32xf32>,
    %c1_i32 = arith.constant 1 : i32
    return
  }
  func.func @transform_0(%arg0: i32) -> (i32, i32) {
    %c0_i32 = arith.constant 0 : i32
    %c0_i32_0 = arith.constant 0 : i32
    return %arg0, %c0_i32 : i32, i32
  }
  func.func @transform_1(%arg0: i32) -> (i32, i32) {
    %c0_i32 = arith.constant 0 : i32
    %c0_i32_0 = arith.constant 0 : i32
    %c0_i32_1 = arith.constant 0 : i32
    return %c0_i32, %c0_i32_0 : i32, i32
  }
  func.func @transform_2(%arg0: i32) -> (i32, i32) {
    %c0_i32 = arith.constant 0 : i32
    %c0_i32_0 = arith.constant 0 : i32
    %c0_i32_1 = arith.constant 0 : i32
    return %c0_i32, %c0_i32_0 : i32, i32
  }
  func.func @transform_3(%arg0: i32) -> (i32, i32) {
    %c0_i32 = arith.constant 0 : i32
    %c0_i32_0 = arith.constant 0 : i32
    %c0_i32_1 = arith.constant 0 : i32
    return %c0_i32, %c0_i32_0 : i32, i32
  }
  func.func @transform_4(%arg0: i32) -> (i32, i32, i32) {
    %c0_i32 = arith.constant 0 : i32
    %c0_i32_0 = arith.constant 0 : i32
    %c0_i32_1 = arith.constant 0 : i32
    return %arg0, %c0_i32, %c0_i32_0 : i32, i32, i32
  }
  func.func @transform_5(%arg0: i32) -> (i32, i32, i32) {
    %c0_i32 = arith.constant 0 : i32
    %c0_i32_0 = arith.constant 0 : i32
    %c0_i32_1 = arith.constant 0 : i32
    return %arg0, %c0_i32, %c0_i32_0 : i32, i32, i32
  }
  func.func @transform_6(%arg0: i32) -> (i32, i32, i32) {
    %c0_i32 = arith.constant 0 : i32
    %c0_i32_0 = arith.constant 0 : i32
    %c0_i32_1 = arith.constant 0 : i32
    return %arg0, %c0_i32, %c0_i32_0 : i32, i32, i32
  }
}

</mosaic_0001>

<bundles_post_ra>
// kernel: tpu_custom_call.1
= control target key start
LH: loop header
LB: loop body
LE: loop exit
PB: predicated region body
PF: predicated region fallthrough
CT: control target
= control target key end

     0   :  { %s1753_s0 = inlined_call_operand.hbm [shape: bf16[32,36], index: 0, kind: input, shape index: {}]   ;;  %s1754_s1 = inlined_call_operand.hbm [shape: bf16[16,48], index: 1, kind: input, shape index: {}]   ;;  %s1755_s2 = inlined_call_operand.hbm [shape: bf16[36,384], index: 2, kind: input, shape index: {}]   ;;  %s1756_s3 = inlined_call_operand.hbm [shape: f32[1,128], index: 3, kind: input, shape index: {}]   ;;  %s1757_s4 = inlined_call_operand.hbm [shape: f32[2,16,32], index: 4, kind: input, shape index: {}]   ;;  %s1758_s5 = inlined_call_operand.hbm [shape: f32[2,16,32], index: 5, kind: output, shape index: {0}]   ;;  %s1759_s6 = inlined_call_operand.hbm [shape: f32[2,16,32], index: 6, kind: output, shape index: {1}]  }
   0x1   :  { %1777 = sst [smem:[#allocation26_spill]] %s1753_s0 }
   0x2   :  { %1778 = sst [smem:[#allocation27_spill]] %s1754_s1 }
   0x3   :  { %1779 = sst [smem:[#allocation28_spill]] %s1759_s6 }
   0x4   :  { %12 = vsyncpa [#allocation4], 0 }
   0x5   :  { %14 = vsyncpa [#allocation4 + $0x1], 0 }
   0x6   :  { %15 = vsyncpa [#allocation7], 0 }
   0x7   :  { %16 = vsyncpa [#allocation10], 0 }
   0x8   :  { %17 = vsyncpa [#allocation5], 0 }
   0x9   :  { %19 = vsyncpa [#allocation5 + $0x1], 0 }
   0xa   :  { %20 = vsyncpa [#allocation14], 0 }
   0xb   :  { %22 = vsyncpa [#allocation14 + $0x1], 0  ;;  %s1382_s21 = smov 0   ;;  %s1384_s22 = smov 0  }
   0xc   :  { %s1386_s23 = smov 0   ;;  %s1388_s24 = smov 0  }
   0xd LB: > { %1780 = sst [smem:[#allocation21_spill]] %s1312_s21  ;;  %s1403_s25 = sadd.s32 4294967295, %s1324_s24   ;;  %s1324_s24 = sphi %s1388_s24, %s1813_s24   ;;  %s1320_s23 = sphi %s1386_s23, %s1815_s23   ;;  %s1316_s22 = sphi %s1384_s22, %s1817_s22   ;;  %s1312_s21 = sphi %s1382_s21, %s1816_s21  }
   0xe   : > { %1781 = sst [smem:[#allocation22_spill]] %s1320_s23  ;;  %s862_s26 = sadd.s32 4294967294, %s1324_s24  }
   0xf   : > { %p48_p0 = scmp.ne.s32.totalorder %s1316_s22, %s1312_s21  ;;  %p1760_p1 = scmp.eq.s32.totalorder %s1403_s25, 0 }
  0x10   : > { %p167_p3 = scmp.eq.s32.totalorder %s862_s26, 1  ;;  %p863_p5 = scmp.ge.s32.totalorder %s1324_s24, 1 }
  0x11   : > { %p1412_p4 = por %p1760_p1, %p48_p0  ;;  %p200_p7 = scmp.lt.s32.totalorder %s1324_s24, 3 }
  0x12   : > { %p1417_p6 = por %p167_p3, %p48_p0  ;;  %s1326_s30 = smov [#allocation6]  }
  0x13   : > { %s1782_s27 = scalar_select %p1412_p4, 1, 0 }
  0x14   : > { %s1783_s28 = scalar_select %p1417_p6, 1, 0 }
  0x15   : > { %p1422_p8 = pnand %p863_p5, %p200_p7  ;;  %s212_s7 = sshll.u32 %s1326_s30, 4  ;;  %s1426_s7 = int_to_ptr.vmem [resolvable:$true] %s212_s7 }
  0x16   : > { %1784 = sst [smem:[#allocation23_spill]] %s1783_s28  ;;  %s1438_s9 = sadd.s32 1, %s1324_s24  }
  0x17   : > { %s1785_s29 = scalar_select %p1422_p8, 1, 0 }
  0x18   : > { %p960_p9 = pneg %p1422_p8  ;;  %1787 = sst [smem:[#allocation24_spill]] %s1438_s9 }
  0x19   : > { %s35_s10 = sadd.s32 1, %s1320_s23  ;;  %s32_s11 = ssub.s32 %s1324_s24, %s1438_s9 }
  0x1a   : > { %p1433_p11 = pnand %p960_p9, %p1760_p1  ;;  %s1788_s1 = sld [smem:[#allocation27_spill]] }
  0x1c   : > { %s1786_s8 = scalar_select %p1433_p11, 1, 0 }
  0x1d   : > { %p1451_p13 = pneg %p1433_p11 }
  0x20   : > { %s1070_s14 = scalar_lea.hbm %s1788_s1, 128 }
  0x21   : > { %p1071_p12 = scmp.ne.s32.totalorder %s1788_s1, %s1070_s14  ;;  %p1077_p5 = scmp.lt.u32.totalorder %s1070_s14, %s1788_s1 }
  0x23   : > { %p1073_p0 = pnand %p1451_p13, %p1071_p12 }
  0x25   : > { %p1074_p3 = pneg %p1073_p0 }
  0x27   : > { %p1079_p7 = pnand %p1077_p5, %p1074_p3 }
  0x29   : > { %1082 = shalt.err (!%p1079_p7)
}
  0x2a   : > { %s1083_s20 = scalar_lea.vmem %s1426_s7, 128  ;;  %p1091_p2 = scmp.lt.s32.totalorder %s1426_s7, %s1426_s7 }
  0x2b   : > { %p1084_p9 = scmp.ne.s32.totalorder %s1426_s7, %s1083_s20  ;;  %p1092_p6 = scmp.lt.s32.totalorder %s1083_s20, %s1083_s20 }
  0x2d   : > { %p1086_p10 = pnand %p1084_p9, %p1451_p13  ;;  %p1093_p12 = por %p1092_p6, %p1091_p2 }
  0x2f   : > { %p1087_p1 = pneg %p1086_p10 }
  0x31   : > { %p1094_p0 = pnand %p1093_p12, %p1087_p1 }
  0x33   : > { %1097 = shalt.err (!%p1094_p0)
}
  0x34   : > { %s1764_s26 = smov 64   ;;  %s1765_s30 = smov 4  }
  0x35   : > { %963 = dma.hbm_to_vmem [thread:$0]  (!%p1433_p11), %s1788_s1, 128, %s1426_s7, [#allocation7], %s1764_s26, %s1764_s26, %s1765_s30  }
  0x36   : > { %p33_p1 = scmp.eq.s32.totalorder %s32_s11, 0  ;;  %p42_p2 = scmp.ne.s32.totalorder %s1320_s23, %s1316_s22 }
  0x37   : > { %p43_p6 = scmp.eq.s32.totalorder %s1324_s24, 0  ;;  %p987_p10 = scmp.lt.s32.totalorder %s1324_s24, 2 }
  0x38   : > { %s1480_s14 = scalar_select %p33_p1, %s1320_s23, %s35_s10  }
  0x39   : > { %p44_p3 = por %p43_p6, %p42_p2  ;;  %p1791_p5 = scmp.eq.s32.totalorder %s1403_s25, 1 }
  0x3a   : > { %1790 = sst [smem:[#allocation25_spill]] %s1480_s14  ;;  %s250_s16 = sand.u32 1, %s1324_s24  }
  0x3b   : > { %p1484_p7 = por %p1791_p5, %p42_p2  ;;  %s252_s18 = sand.u32 1, %s1320_s23  }
  0x3c   : > { %s868_s19 = sshll.u32 %s252_s18, 3  ;;  %s908_s20 = sshll.u32 %s1324_s24, 7 }
  0x3d   : > { %s1792_s15 = scalar_select %p1484_p7, 1, 0 }
  0x3e   : > { %s1793_s0 = sld [smem:[#allocation26_spill]]  ;;  %s254_s10 = scalar_lea.vmem [#allocation3], %s868_s19 }
  0x3f   : > { %s261_s11 = sshll.u32 %s254_s10, 4  ;;  %p1498_p9 = pnand %p987_p10, %p44_p3  ;;  %s1496_s11 = int_to_ptr.vmem [resolvable:$true] %s261_s11 }
  0x40   : > { %s1502_s13 = sshll.u32 %s252_s18, 4  ;;  %s1504_s26 = scalar_lea.sflag [#allocation4], %s250_s16 }
  0x41   : > { %s1794_s12 = scalar_select %p1498_p9, 1, 0 }
  0x42   : > { %p1773_p0 = pneg %p1498_p9 }
  0x44   : > { %s1494_s7 = scalar_lea.hbm %s1793_s0, %s908_s20  ;;  %s1103_s20 = scalar_lea.hbm %s1793_s0, 256 }
  0x45   : > { %s1098_s28 = scalar_lea.hbm %s1494_s7, 128  ;;  %p1104_p6 = scmp.lt.u32.totalorder %s1494_s7, %s1793_s0 }
  0x46   : > { %p1099_p12 = scmp.ne.s32.totalorder %s1494_s7, %s1098_s28  ;;  %p1105_p10 = scmp.lt.u32.totalorder %s1103_s20, %s1098_s28 }
  0x47   : > { %p1107_p5 = scmp.lt.u32.totalorder %s1098_s28, %s1494_s7 }
  0x48   : > { %p1101_p1 = pnand %p1773_p0, %p1099_p12  ;;  %p1106_p3 = por %p1105_p10, %p1104_p6 }
  0x4a   : > { %p1102_p2 = pneg %p1101_p1  ;;  %p1108_p7 = por %p1107_p5, %p1106_p3 }
  0x4c   : > { %p1109_p4 = pnand %p1108_p7, %p1102_p2 }
  0x4e   : > { %1112 = shalt.err (!%p1109_p4)
}
  0x4f   : > { %s1113_s16 = scalar_lea.vmem %s1496_s11, 128  ;;  %s1329_s18 = smov [#allocation3]  }
  0x50   : > { %p1114_p12 = scmp.ne.s32.totalorder %s1496_s11, %s1113_s16  ;;  %s1118_s9 = sshll.u32 %s1329_s18, 4  ;;  %s1119_s9 = int_to_ptr.vmem [resolvable:$false] %s1118_s9 }
  0x51   : > { %s1120_s30 = scalar_lea.vmem %s1119_s9, 256  ;;  %p1121_p11 = scmp.lt.s32.totalorder %s1496_s11, %s1119_s9 }
  0x52   : > { %p1116_p1 = pnand %p1114_p12, %p1773_p0  ;;  %p1122_p6 = scmp.lt.s32.totalorder %s1120_s30, %s1113_s16 }
  0x54   : > { %p1117_p8 = pneg %p1116_p1  ;;  %p1123_p10 = por %p1122_p6, %p1121_p11 }
  0x56   : > { %p1124_p3 = pnand %p1123_p10, %p1117_p8 }
  0x58   : > { %1127 = shalt.err (!%p1124_p3)
}
  0x59   : > { %s1795_s28 = smov 4   ;;  %s1796_s19 = smov 64  }
  0x5a   : > { %973 = dma.hbm_to_vmem [thread:$0]  (!%p1498_p9), %s1494_s7, 128, %s1496_s11, %s1504_s26, %s1796_s19, %s1796_s19, %s1795_s28  }
  0x5b   : > { %s275_s20 = scalar_lea.vmem [#allocation11], %s1502_s13  ;;  %s1330_s18 = smov [#allocation8]  }
  0x5c   : > { %s1536_s10 = sshll.u32 %s275_s20, 4  ;;  %s225_s9 = sshll.u32 %s1330_s18, 4  ;;  %s226_s9 = int_to_ptr.vmem [resolvable:$true] %s225_s9  ;;  %s1581_s10 = int_to_ptr.vmem [resolvable:$true] %s1536_s10 }
  0x5d   : > { %s1128_s0 = scalar_lea.hbm %s1755_s2, 960 }
  0x5e   : > { %p1129_p4 = scmp.ne.s32.totalorder %s1755_s2, %s1128_s0  ;;  %p1135_p7 = scmp.lt.u32.totalorder %s1128_s0, %s1755_s2 }
  0x60   : > { %p1131_p8 = pnand %p1129_p4, %p1451_p13 }
  0x62   : > { %p1132_p11 = pneg %p1131_p8 }
  0x64   : > { %p1137_p2 = pnand %p1135_p7, %p1132_p11 }
  0x66   : > { %1140 = shalt.err (!%p1137_p2)
}
  0x67   : > { %s1141_s7 = scalar_lea.vmem %s226_s9, 960  ;;  %p1149_p6 = scmp.lt.s32.totalorder %s226_s9, %s226_s9 }
  0x68   : > { %p1142_p5 = scmp.ne.s32.totalorder %s226_s9, %s1141_s7  ;;  %p1150_p10 = scmp.lt.s32.totalorder %s1141_s7, %s1141_s7 }
  0x6a   : > { %p1144_p12 = pnand %p1142_p5, %p1451_p13  ;;  %p1151_p3 = por %p1150_p10, %p1149_p6 }
  0x6c   : > { %p1145_p1 = pneg %p1144_p12 }
  0x6e   : > { %p1152_p0 = pnand %p1151_p3, %p1145_p1 }
  0x70   : > { %1155 = shalt.err (!%p1152_p0)
}
  0x71   : > { %s1331_s1 = smov 192   ;;  %s1332_s14 = smov 12  }
  0x72   : > { %p1797_p4 = scmp.ne.s32.totalorder %s1786_s8, 0  ;;  %s1333_s23 = smov [#allocation9]  }
  0x73   : > { %s239_s11 = sshll.u32 %s1333_s23, 4  ;;  %s909_s13 = sshll.u32 %s1324_s24, 8  ;;  %s240_s11 = int_to_ptr.vmem [resolvable:$true] %s239_s11 }
  0x74   : > { %966 = dma.hbm_to_vmem [thread:$0]  (!%p1797_p4), %s1755_s2, 960, %s226_s9, [#allocation7], %s1331_s1, %s1331_s1, %s1332_s14  }
  0x75   : > { %s1560_s20 = scalar_lea.hbm %s1757_s4, %s909_s13  ;;  %s1156_s30 = scalar_lea.hbm %s1756_s3, 16 }
  0x76   : > { %p1157_p0 = scmp.ne.s32.totalorder %s1756_s3, %s1156_s30  ;;  %p1163_p7 = scmp.lt.u32.totalorder %s1156_s30, %s1756_s3 }
  0x78   : > { %p1159_p8 = pnand %p1157_p0, %p1451_p13 }
  0x7a   : > { %p1160_p11 = pneg %p1159_p8 }
  0x7c   : > { %p1165_p2 = pnand %p1163_p7, %p1160_p11 }
  0x7e   : > { %1168 = shalt.err (!%p1165_p2)
}
  0x7f   : > { %s1169_s14 = scalar_lea.vmem %s240_s11, 16  ;;  %s1176_s0 = scalar_lea.vmem %s240_s11, 32 }
  0x80   : > { %p1170_p5 = scmp.ne.s32.totalorder %s240_s11, %s1169_s14  ;;  %p1177_p6 = scmp.lt.s32.totalorder %s240_s11, %s240_s11 }
  0x81   : > { %p1178_p10 = scmp.lt.s32.totalorder %s1176_s0, %s1169_s14 }
  0x82   : > { %p1172_p12 = pnand %p1170_p5, %p1451_p13 }
  0x83   : > { %p1179_p3 = por %p1178_p10, %p1177_p6 }
  0x84   : > { %p1173_p1 = pneg %p1172_p12 }
  0x86   : > { %p1180_p9 = pnand %p1179_p3, %p1173_p1 }
  0x88   : > { %1183 = shalt.err (!%p1180_p9)
}
  0x89   : > { %969 = dma.hbm_to_vmem [thread:$0]  (!%p1797_p4), %s1756_s3, 16, %s240_s11, [#allocation10]  }
  0x8a   : > { %s1184_s17 = scalar_lea.hbm %s1560_s20, 256  ;;  %p1798_p0 = scmp.ne.s32.totalorder %s1794_s12, 0 }
  0x8b   : > { %p1185_p13 = scmp.ne.s32.totalorder %s1560_s20, %s1184_s17  ;;  %s1189_s13 = scalar_lea.hbm %s1757_s4, 512 }
  0x8c   : > { %p1799_p8 = pneg %p1798_p0  ;;  %p1190_p7 = scmp.lt.u32.totalorder %s1560_s20, %s1757_s4 }
  0x8d   : > { %p1191_p2 = scmp.lt.u32.totalorder %s1189_s13, %s1184_s17  ;;  %p1193_p12 = scmp.lt.u32.totalorder %s1184_s17, %s1560_s20 }
  0x8e   : > { %p1187_p11 = pnand %p1185_p13, %p1799_p8 }
  0x8f   : > { %p1192_p5 = por %p1191_p2, %p1190_p7 }
  0x90   : > { %p1188_p9 = pneg %p1187_p11 }
  0x91   : > { %p1194_p4 = por %p1193_p12, %p1192_p5 }
  0x93   : > { %p1195_p1 = pnand %p1194_p4, %p1188_p9 }
  0x95   : > { %1198 = shalt.err (!%p1195_p1)
}
  0x96   : > { %s1199_s11 = scalar_lea.vmem %s1581_s10, 256  ;;  %p1800_p10 = pmov %p1799_p8 }
  0x97   : > { %p1200_p6 = scmp.ne.s32.totalorder %s1581_s10, %s1199_s11  ;;  %s1334_s18 = smov [#allocation11]  }
  0x98   : > { %s1204_s16 = sshll.u32 %s1334_s18, 4  ;;  %s1205_s16 = int_to_ptr.vmem [resolvable:$false] %s1204_s16 }
  0x99   : > { %p1202_p3 = pnand %p1200_p6, %p1800_p10  ;;  %s1206_s30 = scalar_lea.vmem %s1205_s16, 512 }
  0x9a   : > { %p1207_p8 = scmp.lt.s32.totalorder %s1581_s10, %s1205_s16  ;;  %p1208_p11 = scmp.lt.s32.totalorder %s1206_s30, %s1199_s11 }
  0x9b   : > { %p1203_p13 = pneg %p1202_p3 }
  0x9c   : > { %p1209_p7 = por %p1208_p11, %p1207_p8 }
  0x9e   : > { %p1210_p2 = pnand %p1209_p7, %p1203_p13 }
  0xa0   : > { %1213 = shalt.err (!%p1210_p2)
}
  0xa1   : > { %s1335_s7 = smov 128   ;;  %s1336_s9 = smov 8  }
  0xa2   : > { %976 = dma.hbm_to_vmem [thread:$0]  (!%p1798_p0), %s1560_s20, 256, %s1581_s10, %s1504_s26, %s1335_s7, %s1335_s7, %s1336_s9  }
  0xa3   : > { %p1801_p9 = scmp.ne.s32.totalorder %s1785_s29, 0 }
  0xa4   : > { %s296_s1 = sand.u32 (!%p1801_p9), 1, %s1403_s25   ;;  %s1611_s14 = sand.u32 (!%p1801_p9), 1, %s1316_s22  }
  0xa5   : > { %294 = sbr.rel (%p1801_p9) target bundleno = 1168 (0x490), region = 40  ;;  %s875_s0 = sshll.u32 (!%p1801_p9), %s1611_s14, 3 }
  0xa6   : > { %s297_s6 = scalar_lea.sflag (!%p1801_p9), [#allocation4], %s296_s1  ;;  %s1614_s21 = scalar_lea.vmem (!%p1801_p9), [#allocation3], %s875_s0 }
  0xa7   : > { %p1802_p5 = scmp.ne.s32.totalorder (!%p1801_p9), %s1782_s27, 0 }
  0xac   : > { %1287 = dma.done.wait (%p1802_p5), %s297_s6, 128  }
  0xad   : > { %1289 = vsyncadd (%p1802_p5), %s297_s6, 4294967168  ;;  %p1803_p0 = scmp.eq.s32.totalorder %s1403_s25, 0 }
  0xaf   : > { %1291 = dma.done.wait (%p1803_p0), [#allocation7], 1088   ;;  %p1804_p12 = pmov %p1803_p0 }
  0xb0   : > { %p1805_p4 = pmov %p1803_p0 }
  0xb1   : > { %1293 = vsyncadd (%p1804_p12), [#allocation7], 4294966208 }
  0xb2   : > { %1295 = dma.done.wait (%p1805_p4), [#allocation10], 16   ;;  %p1806_p1 = pmov %p1803_p0 }
  0xb3   : > { %s1629_s29 = sshll.u32 %s1611_s14, 4 }
  0xb4   : > { %1297 = vsyncadd (%p1806_p1), [#allocation10], 4294967280  ;;  %s321_s26 = scalar_lea.vmem [#allocation11], %s1629_s29 }
  0xb5   : > { %1299 = dma.done.wait (%p1802_p5), %s297_s6, 256  }
  0xb6   : > { %1301 = vsyncadd (%p1802_p5), %s297_s6, 4294967040  ;;  %v1337_v0 = vmov 0.0   ;;  %v1338_v1 = vmov 0   ;;  %vm1339_vm0 = vmmov 0   ;;  %v1041_v2 = vld [vmem:[#allocation8 + $0x4] ss:$12 sps:$4 sm:$0xff]  }
  0xb7   : > { %920 = vmatprep.subr.bf16.mxu1 %v1337_v0  ;;  %465 = vmatprep.mubr.bf16.mxu0 %v1338_v1  ;;  %v1043_v3 = vld [vmem:[#allocation8] ss:$12 sps:$4 sm:$0xff]   ;;  %v1044_v4 = vld [vmem:[#allocation8 + $0x1c] ss:$12 sps:$4 sm:$0xff]   ;;  %v1046_v5 = vld [vmem:[#allocation8 + $0x18] ss:$12 sps:$4 sm:$0xff]  }
  0xb8   : > { %926 = vmatprep.mubr.msk.bf16.mxu1 %vm1339_vm0, %v1337_v0  ;;  %433 = vmatprep.subr.bf16.mxu0 %v1041_v2  ;;  %v1047_v6 = vld [vmem:[#allocation8 + $0x8] ss:$12 sps:$4 sm:$0xff]   ;;  %vm423_vm1 = vcmask 1041408   ;;  %v1050_v10 = vld [vmem:[#allocation8 + $0x20] ss:$12 sps:$4 sm:$0xff]   ;;  %vm419_vm2 = vcmask 293888  }
  0xb9   : > { %434 = vmatpush1.bf16.msra.mxu0 %v1043_v3  ;;  %v372_v7 = vld [vmem:[#allocation8 + $0x30] sm:$0x33]  ;;  %921 = vmatpush3.bf16.msra.mxu1 %v1047_v6  ;;  %v1052_v11 = vld [vmem:[#allocation8 + $0x38] ss:$0 sps:$4 sm:$0x33]   ;;  %s1340_s27 = smov 32  }
  0xba   : > { %435 = vmatprep.subr.bf16.mxu0 %v1044_v4  ;;  %v890_v8 = vcombine.high %v372_v7, %v372_v7  ;;  %v889_v9 = vcombine.low %v372_v7, %v372_v7  ;;  %922 = vmatprep.subr.bf16.mxu1 %v1337_v0  ;;  %v1051_v13 = vld [vmem:[%s1614_s21] sm:$0xff]   ;;  %v431_v14 = vsel %vm423_vm1, %v1052_v11, 0  ;;  %v1053_v28 = vld [vmem:[#allocation6] sm:$0xff]   ;;  %vm549_vm3 = vcmask 392192   ;;  %s1341_s12 = smov 64   ;;  %s1342_s10 = smov 96  }
  0xbb   : > { %v608_v15 = vld [vmem:[%s321_s26] sm:$0xff]  ;;  %v609_v16 = vld [vmem:[%s321_s26 + $0x8] sm:$0xff]  ;;  %vm660_vm4 = vcmask 261120   ;;  %s352_s20 = scalar_lea.vmem [#allocation12], %s1629_s29  ;;  %s910_s23 = sshll.u32 %s1403_s25, 8 }
  0xbc   : > { %v425_v12 = vsel %vm423_vm1, %v889_v9, 0  ;;  %612 = vrot.lane.b32.xlu1 %v608_v15, %s1340_s27  ;;  %v895_v29 = vld [vmem:[#allocation9] ss:$0 sm:$0xff]  ;;  %s692_s17 = sshll.u32 %s352_s20, 4  ;;  %s1657_s8 = scalar_lea.vmem [#allocation13], %s1629_s29  ;;  %s1653_s17 = int_to_ptr.vmem [resolvable:$true] %s692_s17 }
  0xbd   : > { %436 = vmatpush1.bf16.msra.mxu0 %v1046_v5  ;;  %923 = vmatpush3.bf16.msra.mxu1 %v1050_v10  ;;  %s708_s13 = sshll.u32 %s1657_s8, 4  ;;  %s1665_s11 = scalar_lea.hbm %s1758_s5, %s910_s23  ;;  %s1667_s13 = int_to_ptr.vmem [resolvable:$true] %s708_s13 }
  0xbe   : > { %892 = vmatprep.subr.msk.bf16.mxu0 %vm423_vm1, %v890_v8  ;;  %924 = vmatprep.subr.bf16.mxu1 %v1337_v0  ;;  %s674_s18 = scalar_lea.sflag [#allocation5], %s1611_s14  ;;  %s1214_s16 = scalar_lea.vmem %s1653_s17, 256 }
  0xbf   : > { %p1215_p6 = scmp.ne.s32.totalorder %s1653_s17, %s1214_s16  ;;  %p1807_p10 = scmp.ne.s32.totalorder %s1792_s15, 0 }
  0xc0   : > { %614 = vrot.lane.b32.xlu1 %v609_v16, %s1340_s27  ;;  %s1343_s30 = smov [#allocation12]  }
  0xc1   : > { %438 = vmatpush1.bf16.msra.mxu0 %v425_v12  ;;  %925 = vmatpush3.bf16.msra.mxu1 %v431_v14  ;;  %p1216_p3 = pnand %p1215_p6, %p1807_p10  ;;  %s1218_s7 = sshll.u32 %s1343_s30, 4  ;;  %s1219_s7 = int_to_ptr.vmem [resolvable:$false] %s1218_s7 }
  0xc2   : > { %930 = vmatprep.subr.bf16.mxu0 %v1337_v0  ;;  %s1220_s9 = scalar_lea.vmem %s1219_s7, 512  ;;  %p1221_p8 = scmp.lt.s32.totalorder %s1653_s17, %s1219_s7 }
  0xc3   : > { %p1217_p13 = pneg %p1216_p3  ;;  %p1222_p11 = scmp.lt.s32.totalorder %s1220_s9, %s1214_s16 }
  0xc4   : > { %893 = vmatmul.mubr.msk.bf16.vlgmr.msra.gmra.mrb[0].mxu0 %vm419_vm2, %v1051_v13  ;;  %927 = vmatmul.mubr.msk.bf16.vlgmr.msra.gmra.mrb[0].mxu1 %vm419_vm2, %v1051_v13 }
  0xc5   : > { %936 = vmatprep.mubr.msk.bf16.mxu0 %vm1339_vm0, %v1337_v0  ;;  %p1223_p7 = por %p1222_p11, %p1221_p8 }
  0xc7   : > { %p1224_p2 = pnand %p1223_p7, %p1217_p13 }
 0x12e   : > { %v613_v50 = vpop.permute.xlu1 %612 }
 0x132   : > { %v615_v52 = vpop.permute.xlu1 %614 }
 0x197   : > { %v467_v17 = vpop.f32.mrb[0].mxu0  ;;  %v510_v20 = vpop.f32.mrb[0].mxu1 }
 0x198   : > { %v469_v18 = vpop.f32.mrb[1].mxu0  ;;  %v928_v23 = vpop.f32.mrb[1].mxu1 }
 0x199   : > { %v471_v19 = vpop.f32.mrb[2].mxu0  ;;  %v513_v25 = vpop.f32.mrb[2].mxu1 }
 0x19a   : > { %v535_v21 = vpack.c.bf16 %v471_v19, %v467_v17  ;;  %v473_v22 = vpop.f32.mrb[3].mxu0  ;;  %v537_v26 = vpack.c.bf16 %v513_v25, %v510_v20  ;;  %v929_v27 = vpop.f32.mrb[3].mxu1 }
 0x19b   : > { %v536_v24 = vpack.c.bf16 %v473_v22, %v469_v18 }
 0x19c   : > { %931 = vmatpush3.bf16.msra.mxu0 %v535_v21 }
 0x19d   : > { %932 = vmatprep.subr.bf16.mxu0 %v1337_v0 }
 0x1a0   : > { %933 = vmatpush3.bf16.msra.mxu0 %v536_v24 }
 0x1a1   : > { %934 = vmatprep.subr.bf16.mxu0 %v1337_v0 }
 0x1a4   : > { %935 = vmatpush3.bf16.msra.mxu0 %v537_v26 }
 0x1a7   : > { %937 = vmatmul.mubr.msk.bf16.vlgmr.msra.gmra.mrb[4].mxu0 %vm549_vm3, %v1053_v28 }
 0x27a   : > { %v587_v30 = vpop.f32.mrb[4].mxu0 }
 0x27b   : > { %v588_v31 = vadd.f32 %v895_v29, %v587_v30  ;;  %v938_v32 = vpop.f32.mrb[5].mxu0 }
 0x27c   : > { %v590_v33 = vpop.f32.mrb[6].mxu0 }
 0x27d   : > { %1054 = vtanh.f32 %v588_v31  ;;  %v591_v34 = vadd.f32 %v895_v29, %v590_v33  ;;  %v939_v35 = vpop.f32.mrb[7].mxu0  ;;  %v898_v38 = vmul.f32 -1.442695, %v588_v31 }
 0x27f   : > { %1056 = vtanh.f32 %v591_v34  ;;  %v899_v39 = vmul.f32 -1.442695, %v591_v34 }
 0x280   : > { %1058 = vpow2.f32 %v898_v38 }
 0x281   : > { %1060 = vpow2.f32 %v899_v39 }
 0x287   : > { %v1055_v36 = vpop.eup %1054 }
 0x288   : > { %622 = vrot.lane.b32.xlu0 %v1055_v36, %s1340_s27 }
 0x289   : > { %v1057_v37 = vpop.eup %1056 }
 0x28a   : > { %v1059_v40 = vpop.eup %1058 }
 0x28b   : > { %v600_v41 = vadd.f32 1.0, %v1059_v40  ;;  %v1061_v42 = vpop.eup %1060 }
 0x28c   : > { %624 = vrot.lane.b32.xlu0 %v1057_v37, %s1340_s27  ;;  %v601_v43 = vadd.f32 1.0, %v1061_v42 }
 0x28d   : > { %1062 = vrcp.f32 %v600_v41 }
 0x28e   : > { %1064 = vrcp.f32 %v601_v43 }
 0x297   : > { %v1063_v44 = vpop.eup %1062 }
 0x298   : > { %v1065_v47 = vpop.eup %1064  ;;  %v618_v51 = vmul.f32 %v1063_v44, %v613_v50 }
 0x299   : > { %v619_v55 = vmul.f32 %v1065_v47, %v615_v52 }
 0x2fa   : > { %v623_v45 = vpop.permute.xlu0 %622 }
 0x2fb   : > { %v628_v46 = vmul.f32 %v1063_v44, %v623_v45 }
 0x2fd   : > { %632 = vrot.lane.b32.xlu0 %v628_v46, %s1340_s27 }
 0x2fe   : > { %v625_v48 = vpop.permute.xlu0 %624 }
 0x2ff   : > { %v629_v49 = vmul.f32 %v1065_v47, %v625_v48 }
 0x301   : > { %634 = vrot.lane.b32.xlu1 %v629_v49, %s1340_s27 }
 0x36f   : > { %v633_v53 = vpop.permute.xlu0 %632 }
 0x370   : > { %v638_v54 = vadd.f32 %v633_v53, %v618_v51 }
 0x372   : > { %1066 = vtanh.f32 %v638_v54 }
 0x373   : > { %v635_v56 = vpop.permute.xlu1 %634 }
 0x374   : > { %v639_v57 = vadd.f32 %v635_v56, %v619_v55 }
 0x376   : > { %1068 = vtanh.f32 %v639_v57 }
 0x37c   : > { %v1067_v58 = vpop.eup %1066 }
 0x37d   : > { %644 = vrot.lane.b32.xlu0 %v1067_v58, %s1340_s27 }
 0x380   : > { %v1069_v59 = vpop.eup %1068 }
 0x381   : > { %646 = vrot.lane.b32.xlu1 %v1069_v59, %s1340_s27 }
 0x3ef   : > { %v645_v60 = vpop.permute.xlu0 %644 }
 0x3f0   : > { %v650_v61 = vmul.f32 %v1063_v44, %v645_v60 }
 0x3f2   : > { %654 = vrot.lane.b32.xlu0 %v650_v61, %s1341_s12 }
 0x3f3   : > { %v647_v62 = vpop.permute.xlu1 %646 }
 0x3f4   : > { %v651_v63 = vmul.f32 %v1065_v47, %v647_v62 }
 0x3f6   : > { %665 = vrot.lane.b32.xlu0 %v638_v54, %s1342_s10  ;;  %656 = vrot.lane.b32.xlu1 %v651_v63, %s1341_s12 }
 0x3fa   : > { %667 = vrot.lane.b32.xlu1 %v639_v57, %s1342_s10 }
 0x464   : > { %v655_v0 = vpop.permute.xlu0 %654 }
 0x465   : > { %661 = vst.msk [vmem:[%s352_s20] sm:$0xff] %vm660_vm4, %v655_v0 }
 0x468   : > { %v666_v1 = vpop.permute.xlu0 %665  ;;  %v657_v2 = vpop.permute.xlu1 %656 }
 0x469   : > { %671 = vst.msk [vmem:[%s1657_s8] sm:$0xff] %vm660_vm4, %v666_v1  ;;  %662 = vst.msk [vmem:[%s352_s20 + $0x8] sm:$0xff] %vm660_vm4, %v657_v2 }
 0x46a   : > { %1227 = shalt.err (!%p1224_p2)
}
 0x46b   : > { %s1228_s1 = scalar_lea.hbm %s1665_s11, 256  ;;  %s1232_s21 = scalar_lea.hbm %s1758_s5, 512 }
 0x46c   : > { %p1229_p9 = scmp.ne.s32.totalorder %s1665_s11, %s1228_s1  ;;  %p1233_p12 = scmp.lt.u32.totalorder %s1665_s11, %s1758_s5 }
 0x46d   : > { %p1234_p4 = scmp.lt.u32.totalorder %s1232_s21, %s1228_s1  ;;  %p1236_p6 = scmp.lt.u32.totalorder %s1228_s1, %s1665_s11 }
 0x46e   : > { %p1230_p5 = pnand %p1229_p9, %p1807_p10 }
 0x46f   : > { %p1235_p1 = por %p1234_p4, %p1233_p12 }
 0x470   : > { %p1231_p0 = pneg %p1230_p5 }
 0x471   : > { %p1237_p3 = por %p1236_p6, %p1235_p1 }
 0x473   : > { %p1238_p13 = pnand %p1237_p3, %p1231_p0 }
 0x475   : > { %1241 = shalt.err (!%p1238_p13)
}
 0x476   : > { %s1344_s27 = smov 128   ;;  %s1345_s12 = smov 8   ;;  %v668_v3 = vpop.permute.xlu1 %667 }
 0x477   : > { %956 = dma.vmem_to_hbm [thread:$0]  (%p1807_p10), %s1653_s17, 256, %s1665_s11, %s674_s18, %s1344_s27, %s1344_s27, %s1345_s12  }
 0x478   : > { %s1808_s28 = sld [smem:[#allocation28_spill]]  ;;  %672 = vst.msk [vmem:[%s1657_s8 + $0x8] sm:$0xff] %vm660_vm4, %v668_v3  ;;  %s679_s16 = scalar_lea.sflag [#allocation14], %s1611_s14 }
 0x479   : > { %s1242_s30 = scalar_lea.vmem %s1667_s13, 256  ;;  %s1346_s7 = smov [#allocation13]  }
 0x47a   : > { %p1243_p8 = scmp.ne.s32.totalorder %s1667_s13, %s1242_s30  ;;  %s1246_s9 = sshll.u32 %s1346_s7, 4  ;;  %s1247_s9 = int_to_ptr.vmem [resolvable:$false] %s1246_s9 }
 0x47b   : > { %s1248_s1 = scalar_lea.vmem %s1247_s9, 512  ;;  %p1249_p2 = scmp.lt.s32.totalorder %s1667_s13, %s1247_s9 }
 0x47c   : > { %p1244_p11 = pnand %p1243_p8, %p1807_p10  ;;  %p1250_p9 = scmp.lt.s32.totalorder %s1248_s1, %s1242_s30 }
 0x47e   : > { %s1704_s19 = scalar_lea.hbm %s1808_s28, %s910_s23  ;;  %p1245_p7 = pneg %p1244_p11 }
 0x47f   : > { %p1251_p5 = por %p1250_p9, %p1249_p2 }
 0x481   : > { %p1252_p0 = pnand %p1251_p5, %p1245_p7 }
 0x483   : > { %1255 = shalt.err (!%p1252_p0)
}
 0x484   : > { %s1256_s25 = scalar_lea.hbm %s1704_s19, 256  ;;  %s1260_s8 = scalar_lea.hbm %s1808_s28, 512 }
 0x485   : > { %p1257_p12 = scmp.ne.s32.totalorder %s1704_s19, %s1256_s25  ;;  %p1261_p6 = scmp.lt.u32.totalorder %s1704_s19, %s1808_s28 }
 0x486   : > { %p1262_p3 = scmp.lt.u32.totalorder %s1260_s8, %s1256_s25  ;;  %p1264_p8 = scmp.lt.u32.totalorder %s1256_s25, %s1704_s19 }
 0x487   : > { %p1258_p4 = pnand %p1257_p12, %p1807_p10 }
 0x488   : > { %p1263_p13 = por %p1262_p3, %p1261_p6 }
 0x489   : > { %p1259_p1 = pneg %p1258_p4 }
 0x48a   : > { %p1265_p11 = por %p1264_p8, %p1263_p13 }
 0x48c   : > { %p1266_p7 = pnand %p1265_p11, %p1259_p1 }
 0x48e   : > { %1269 = shalt.err (!%p1266_p7)
}
 0x48f   : > { %957 = dma.vmem_to_hbm [thread:$0]  (%p1807_p10), %s1667_s13, 256, %s1704_s19, %s679_s16, %s1344_s27, %s1344_s27, %s1345_s12  }
 0x490 PF: > { %s1809_s0 = sld [smem:[#allocation21_spill]]  ;;  %s1810_s6 = sld [smem:[#allocation23_spill]] }
 0x491   : > { %p1812_p9 = scmp.ge.s32.totalorder %s1324_s24, 2 }
 0x496   : > { %s723_s21 = sand.u32 1, %s1809_s0   ;;  %p1811_p2 = scmp.ne.s32.totalorder %s1810_s6, 0 }
 0x497   : > { %s724_s29 = scalar_lea.sflag [#allocation5], %s723_s21 }
 0x498   : > { %p978_p5 = pnand %p1812_p9, %p1811_p2 }
 0x49a   : > { %1303 = dma.done.wait (!%p978_p5), %s724_s29, 256  }
 0x49b   : > { %1305 = vsyncadd (!%p978_p5), %s724_s29, 4294967040  ;;  %s733_s15 = scalar_lea.sflag [#allocation14], %s723_s21 }
 0x49c   : > { %1307 = dma.done.wait (!%p978_p5), %s733_s15, 256  }
 0x49d   : > { %1309 = vsyncadd (!%p978_p5), %s733_s15, 4294967040  ;;  %s1813_s24 = sld [smem:[#allocation24_spill]]  ;;  %s1814_s14 = sld [smem:[#allocation22_spill]] }
 0x49e   : > { %s1815_s23 = sld [smem:[#allocation25_spill]]  ;;  %s1816_s21 = smov %s1316_s22 }
 0x4a3   : > { %p25_p10 = scmp.ge.s32.totalorder %s1813_s24, 4   ;;  %s1817_s22 = smov %s1814_s14 }
 0x4a5   :  { %27 = sbr.rel (!%p25_p10) target bundleno = 13 (0xd), region = 126 }
 0x4ac   :  { %738 = vsyncpa [#allocation4], 1 }
 0x4ad   :  { %740 = vsyncpa [#allocation4 + $0x1], 1 }
 0x4ae   :  { %741 = vsyncpa [#allocation7], 1 }
 0x4af   :  { %742 = vsyncpa [#allocation10], 1 }
 0x4b0   :  { %743 = vsyncpa [#allocation5], 1 }
 0x4b1   :  { %745 = vsyncpa [#allocation5 + $0x1], 1 }
 0x4b2   :  { %746 = vsyncpa [#allocation14], 1 }
 0x4b3   :  { %748 = vsyncpa [#allocation14 + $0x1], 1 }

</bundles_post_ra>
